<compile_context>
chip_gen: v6e
topology: v6e:2x2x1
jax: 0.10.0
libtpu: 0.0.40
codegen_flags: <defaults>
</compile_context>

<pallas_src>
import functools

import jax
import jax.numpy as jnp
from jax.experimental import pallas as pl
from jax.experimental.pallas import tpu as pltpu


def _round_up(x, m):
    return ((x + m - 1) // m) * m


def _cdiv(a, b):
    return (a + b - 1) // b


def qnetwork_kernel(state_ref, w_all_ref, bias_ref, out_ref, *,
                    s2p, hd_pad, n_pad, n_heads, action_scale):
    """Whole forward pass for one batch tile.

    state_ref : (TB, s2p)  packed [prev | cur] (zero-padded cols)
    w_all_ref : (R, W)     packed weight slab  [w_mix ; w_feat ; w_h1 ; w_h2]
    bias_ref  : (4, W)     packed f32 biases
    out_ref   : (TB, n_pad) lane-dense output slab
    """
    dt = w_all_ref.dtype
    r_feat = s2p
    r_h1 = s2p + 256
    r_h2 = s2p + 256 + 128

    # Packed f32 biases (bias/ReLU/epilogue math stays f32 on every chip).
    b_mix = bias_ref[0:1, 0:256]
    b_feat = bias_ref[1:2, 0:128]
    b_h1 = bias_ref[2:3, 0:hd_pad]
    b_h2 = bias_ref[3:4, 0:n_pad]

    # state_mix: Linear(2*S, 256) + ReLU. prev|cur already packed -> one dot.
    h = jnp.dot(state_ref[...], w_all_ref[0:s2p, 0:256],
                preferred_element_type=jnp.float32)
    h = jnp.maximum(h + b_mix, 0.0)                      # (TB, 256) f32

    # feature: Linear(256, 128) + ReLU.
    f = jnp.dot(h.astype(dt), w_all_ref[r_feat:r_feat + 256, 0:128],
                preferred_element_type=jnp.float32)
    f = jnp.maximum(f + b_feat, 0.0)                     # (TB, 128) f32

    # Fused first layer of all H action heads + value head (lane-dense N).
    hh = jnp.dot(f.astype(dt), w_all_ref[r_h1:r_h1 + 128, 0:hd_pad],
                 preferred_element_type=jnp.float32)
    hh = jnp.maximum(hh + b_h1, 0.0)                     # (TB, hd_pad) f32

    # Fused block-diagonal second layer. Column layout:
    #   [head0 actions | ... | headH-1 actions | per-head means | value | pad]
    g = jnp.dot(hh.astype(dt), w_all_ref[r_h2:r_h2 + hd_pad, 0:n_pad],
                preferred_element_type=jnp.float32) + b_h2   # (TB, n_pad) f32

    # Dueling combine with static lane slices (no iota / masked reductions).
    ha = n_heads * action_scale
    maxa = jnp.max(g[:, ha:ha + n_heads], axis=-1, keepdims=True)
    value = g[:, ha + n_heads:ha + n_heads + 1]

    # f32 combine, single cast at the final (lane-dense, unmasked) store.
    out_ref[...] = (g - maxa + value).astype(out_ref.dtype)


@functools.partial(jax.jit,
                   static_argnames=("n_heads", "action_scale", "out_dtype"))
def qnetwork_forward(prev_state, cur_state, fp, *, n_heads, action_scale,
                     out_dtype=jnp.float32):
    batch, s = prev_state.shape
    dt = fp["w_all"].dtype
    R, W = fp["w_all"].shape

    # Static layout constants (must match fuse_params).
    s2p = _round_up(2 * s, 8)
    hd_pad = _round_up((n_heads + 1) * 64, 128)
    n_pad = _round_up(n_heads * action_scale + n_heads + 1, 128)
    assert R == s2p + 256 + 128 + hd_pad, "weight slab layout mismatch"

    # ---- batch tiling ------------------------------------------------------
    # Minimize padding: n_tiles = cdiv(b8, TB_MAX), tb = round_up(b8/n_tiles, 8).
    # Per-row VMEM cost is only a few KB, so 1024-row tiles fit comfortably on
    # v5e/v6e (128 MiB) and v7x (64 MiB). Keep >= 2 even tiles once the batch
    # is large enough so the "parallel" axis can split across v7x's 2 TCs.
    TB_MAX = 1024
    b8 = _round_up(batch, 8)
    n_tiles = _cdiv(b8, TB_MAX)
    if b8 >= 512:
        n_tiles = max(n_tiles, 2)
    if n_tiles > 1 and n_tiles % 2:
        n_tiles += 1
    tb = _round_up(_cdiv(b8, n_tiles), 8)
    b_pad = n_tiles * tb

    # Pack prev|cur into one input slab (also handles batch / K padding).
    # NOTE: inputs are cast to the compute dtype of the weights so the MXU can
    # run bf16 when a bf16 parameter pack is used.
    state = jnp.zeros((b_pad, s2p), dt)
    state = state.at[:batch, :s].set(prev_state.astype(dt))
    state = state.at[:batch, s:2 * s].set(cur_state.astype(dt))

    kernel = functools.partial(qnetwork_kernel, s2p=s2p, hd_pad=hd_pad,
                               n_pad=n_pad, n_heads=n_heads,
                               action_scale=action_scale)

    flops = 2 * b_pad * (s2p * 256 + 256 * 128 + 128 * hd_pad + hd_pad * n_pad)
    bytes_accessed = (state.size * state.dtype.itemsize
                      + fp["w_all"].size * fp["w_all"].dtype.itemsize
                      + fp["biases"].size * fp["biases"].dtype.itemsize
                      + b_pad * n_pad * jnp.dtype(out_dtype).itemsize)

    out = pl.pallas_call(
        kernel,
        out_shape=jax.ShapeDtypeStruct((b_pad, n_pad), out_dtype),
        grid=(n_tiles,),
        in_specs=[
            pl.BlockSpec((tb, s2p), lambda i: (i, 0)),   # packed prev|cur
            pl.BlockSpec((R, W), lambda i: (0, 0)),      # packed weight slab
            pl.BlockSpec((4, W), lambda i: (0, 0)),      # packed f32 biases
        ],
        out_specs=pl.BlockSpec((tb, n_pad), lambda i: (i, 0)),
        compiler_params=pltpu.CompilerParams(
            dimension_semantics=("parallel",),
            vmem_limit_bytes=32 * 1024 * 1024),
        cost_estimate=pl.CostEstimate(flops=flops, transcendentals=0,
                                      bytes_accessed=bytes_accessed),
    )(state, fp["w_all"], fp["biases"])

    ha = n_heads * action_scale
    acts = out[:batch, :ha].reshape(batch, n_heads, action_scale)
    return jnp.transpose(acts, (1, 0, 2))                 # (H, B, A)


def fuse_params(raw, compute_dtype=jnp.float32):
    """One-time fusion of per-layer params into lane-dense kernel slabs.

    Weight slab rows: [w_mix (s2p) ; w_feat (256) ; w_h1 (128) ; w_h2 (hd_pad)]
    compute_dtype=jnp.bfloat16 gives bf16 MXU operands (recommended on v5e);
    biases stay f32 in a separate (4, W) slab.
    """
    H, _, A = raw["w_a2"].shape
    s2 = raw["w_mix"].shape[0]
    s2p = _round_up(s2, 8)
    hd = (H + 1) * 64
    hd_pad = _round_up(hd, 128)
    # Mean/value columns sit directly after the action columns, so they live in
    # the action group's 128-lane padding whenever it has room (only bump n_pad
    # when unavoidable).
    n_raw = H * A + H + 1
    n_pad = _round_up(n_raw, 128)
    W = max(256, hd_pad, n_pad)

    # Fused first layer of the H action heads + value head.
    w_h1 = jnp.zeros((128, hd_pad), jnp.float32)
    b_h1 = jnp.zeros((hd_pad,), jnp.float32)
    for h in range(H):
        w_h1 = w_h1.at[:, h * 64:(h + 1) * 64].set(raw["w_a1"][h])
        b_h1 = b_h1.at[h * 64:(h + 1) * 64].set(raw["b_a1"][h, 0])
    w_h1 = w_h1.at[:, H * 64:H * 64 + 64].set(raw["w_v1"])
    b_h1 = b_h1.at[H * 64:H * 64 + 64].set(raw["b_v1"][0])

    # Block-diagonal second layer + baked per-head mean columns + value column.
    w_h2 = jnp.zeros((hd_pad, n_pad), jnp.float32)
    b_h2 = jnp.zeros((n_pad,), jnp.float32)
    for h in range(H):
        w_h2 = w_h2.at[h * 64:(h + 1) * 64, h * A:(h + 1) * A].set(raw["w_a2"][h])
        b_h2 = b_h2.at[h * A:(h + 1) * A].set(raw["b_a2"][h, 0])
        w_h2 = w_h2.at[h * 64:(h + 1) * 64, H * A + h].set(
            raw["w_a2"][h].mean(axis=-1))
        b_h2 = b_h2.at[H * A + h].set(raw["b_a2"][h, 0].mean())
    w_h2 = w_h2.at[H * 64:H * 64 + 64, H * A + H].set(raw["w_v2"][:, 0])
    b_h2 = b_h2.at[H * A + H].set(raw["b_v2"][0, 0])

    # Single VMEM-resident packed weight slab (one prologue DMA).
    R = s2p + 256 + 128 + hd_pad
    w_all = jnp.zeros((R, W), jnp.float32)
    w_all = w_all.at[0:s2, 0:256].set(raw["w_mix"])
    w_all = w_all.at[s2p:s2p + 256, 0:128].set(raw["w_feat"])
    w_all = w_all.at[s2p + 256:s2p + 384, 0:hd_pad].set(w_h1)
    w_all = w_all.at[s2p + 384:s2p + 384 + hd_pad, 0:n_pad].set(w_h2)

    biases = jnp.zeros((4, W), jnp.float32)
    biases = biases.at[0, :256].set(raw["b_mix"][0])
    biases = biases.at[1, :128].set(raw["b_feat"][0])
    biases = biases.at[2, :hd_pad].set(b_h1)
    biases = biases.at[3, :n_pad].set(b_h2)

    return {"w_all": w_all.astype(compute_dtype), "biases": biases}


def init_params(key, state_dim, action_dim, action_scale):
    """Deterministic synthetic init (uniform +/- 1/sqrt(fan_in), like nn.Linear)."""
    def lin(k, fan_in, fan_out):
        bound = 1.0 / jnp.sqrt(float(fan_in))
        kw, kb = jax.random.split(k)
        w = jax.random.uniform(kw, (fan_in, fan_out), jnp.float32, -bound, bound)
        b = jax.random.uniform(kb, (fan_out,), jnp.float32, -bound, bound)
        return w, b

    keys = jax.random.split(key, 4 + 2 * action_dim)
    w_mix, b_mix = lin(keys[0], state_dim * 2, 256)
    w_feat, b_feat = lin(keys[1], 256, 128)
    w_v1, b_v1 = lin(keys[2], 128, 64)
    w_v2, b_v2 = lin(keys[3], 64, 1)

    a1_w, a1_b, a2_w, a2_b = [], [], [], []
    for i in range(action_dim):
        w1, b1 = lin(keys[4 + 2 * i], 128, 64)
        w2, b2 = lin(keys[5 + 2 * i], 64, action_scale)
        a1_w.append(w1); a1_b.append(b1); a2_w.append(w2); a2_b.append(b2)

    return {
        "w_mix": w_mix, "b_mix": b_mix.reshape(1, -1),
        "w_feat": w_feat, "b_feat": b_feat.reshape(1, -1),
        "w_a1": jnp.stack(a1_w), "b_a1": jnp.stack(a1_b)[:, None, :],
        "w_a2": jnp.stack(a2_w), "b_a2": jnp.stack(a2_b)[:, None, :],
        "w_v1": w_v1, "b_v1": b_v1.reshape(1, -1),
        "w_v2": w_v2, "b_v2": b_v2.reshape(1, -1),
    }


def qnetwork_reference(prev_state, cur_state, p):
    """Pure-JAX reference matching the PyTorch forward semantics."""
    state = jnp.concatenate([prev_state, cur_state], axis=-1)
    h = jax.nn.relu(state @ p["w_mix"] + p["b_mix"])
    f = jax.nn.relu(h @ p["w_feat"] + p["b_feat"])
    vh = jax.nn.relu(f @ p["w_v1"] + p["b_v1"])
    value = vh @ p["w_v2"] + p["b_v2"]
    acts = []
    for hd in range(p["w_a1"].shape[0]):
        ah = jax.nn.relu(f @ p["w_a1"][hd] + p["b_a1"][hd])
        acts.append(ah @ p["w_a2"][hd] + p["b_a2"][hd])
    actions = jnp.stack(acts, axis=0)
    maxa = jnp.max(jnp.mean(actions, axis=-1), axis=0)[:, None]
    return actions - maxa + value


if __name__ == "__main__":
    state_dim, action_dim, action_scale = 8, 3, 5
    batch = 4

    key = jax.random.PRNGKey(0)
    kp, k_prev, k_cur = jax.random.split(key, 3)

    raw = init_params(kp, state_dim, action_dim, action_scale)
    prev_state = jax.random.normal(k_prev, (batch, state_dim), jnp.float32)
    cur_state = jax.random.normal(k_cur, (batch, state_dim), jnp.float32)

    ref = qnetwork_reference(prev_state, cur_state, raw)

    # float32 weights, f32 output: tight check against the reference.
    fp32 = fuse_params(raw, jnp.float32)
    out32 = qnetwork_forward(prev_state, cur_state, fp32,
                             n_heads=action_dim, action_scale=action_scale)
    jax.block_until_ready(out32)
    assert out32.shape == (action_dim, batch, action_scale), out32.shape
    assert jnp.allclose(out32, ref, atol=1e-5, rtol=1e-5), (
        float(jnp.max(jnp.abs(out32 - ref))))

    # bf16 MXU operands + bf16 output slab (f32 accumulate + f32 combine):
    # loose check.
    fpbf = fuse_params(raw, jnp.bfloat16)
    outbf = qnetwork_forward(prev_state, cur_state, fpbf,
                             n_heads=action_dim, action_scale=action_scale,
                             out_dtype=jnp.bfloat16)
    jax.block_until_ready(outbf)
    assert outbf.shape == (action_dim, batch, action_scale), outbf.shape
    err = float(jnp.max(jnp.abs(outbf.astype(jnp.float32) - ref)))
    assert err < 7e-2, err

    print("KERNEL_OK")
</pallas_src>

<mosaic_0001>
module attributes {stable_mosaic.version = 11 : i64} {
  func.func @qnetwork_kernel(%arg0: i32, %arg1: memref<8x16xf32, #tpu.memory_space<vmem>>, %arg2: memref<656x256xf32, #tpu.memory_space<vmem>>, %arg3: memref<4x256xf32, #tpu.memory_space<vmem>>, %arg4: memref<8x128xf32, #tpu.memory_space<vmem>>) attributes {dimension_semantics = [#tpu.dimension_semantics<parallel>], iteration_bounds = array<i64: 1>, scalar_prefetch = 0 : i64, scratch_operands = 0 : i64, tpu.core_type = #tpu.core_type<tc>, window_params = [{transform_indices = @transform_0, window_bounds = array<i64: 8, 16>}, {pipeline_mode = #tpu.pipeline_mode<synchronous>, transform_indices = @transform_1, window_bounds = array<i64: 656, 256>}, {pipeline_mode = #tpu.pipeline_mode<synchronous>, transform_indices = @transform_2, window_bounds = array<i64: 4, 256>}, {transform_indices = @transform_3, window_bounds = array<i64: 8, 128>}]} {
    %c0 = arith.constant 0 : index
    %c0_0 = arith.constant 0 : index
    %0 = vector.load %arg3[%c0, %c0_0] : memref<4x256xf32, #tpu.memory_space<vmem>>, vector<1x256xf32>
    %c1 = arith.constant 1 : index
    %c0_1 = arith.constant 0 : index
    %1 = vector.load %arg3[%c1, %c0_1] : memref<4x256xf32, #tpu.memory_space<vmem>>, vector<1x128xf32>
    %c2 = arith.constant 2 : index
    %c0_2 = arith.constant 0 : index
    %2 = vector.load %arg3[%c2, %c0_2] : memref<4x256xf32, #tpu.memory_space<vmem>>, vector<1x256xf32>
    %c3 = arith.constant 3 : index
    %c0_3 = arith.constant 0 : index
    %3 = vector.load %arg3[%c3, %c0_3] : memref<4x256xf32, #tpu.memory_space<vmem>>, vector<1x128xf32>
    %c0_4 = arith.constant 0 : index
    %c0_5 = arith.constant 0 : index
    %4 = vector.load %arg1[%c0_4, %c0_5] : memref<8x16xf32, #tpu.memory_space<vmem>>, vector<8x16xf32>
    %c0_6 = arith.constant 0 : index
    %c0_7 = arith.constant 0 : index
    %5 = vector.load %arg2[%c0_6, %c0_7] : memref<656x256xf32, #tpu.memory_space<vmem>>, vector<16x256xf32>
    %cst = arith.constant dense<0.000000e+00> : vector<8x256xf32>
    %6 = tpu.matmul %4, %5, %cst {dimension_numbers = #tpu.dot_dimension_numbers<[1], [0], [0], [1], [0, 0, 1, 1], [], []>} : vector<8x16xf32>, vector<16x256xf32>, vector<8x256xf32> -> vector<8x256xf32>
    %7 = vector.broadcast %0 : vector<1x256xf32> to vector<8x256xf32>
    %8 = arith.addf %6, %7 : vector<8x256xf32>
    %cst_8 = arith.constant 0.000000e+00 : f32
    %9 = vector.broadcast %cst_8 : f32 to vector<8x256xf32>
    %10 = arith.maximumf %8, %9 : vector<8x256xf32>
    %c16 = arith.constant 16 : index
    %c0_9 = arith.constant 0 : index
    %11 = vector.load %arg2[%c16, %c0_9] : memref<656x256xf32, #tpu.memory_space<vmem>>, vector<256x128xf32>
    %cst_10 = arith.constant dense<0.000000e+00> : vector<8x128xf32>
    %12 = tpu.matmul %10, %11, %cst_10 {dimension_numbers = #tpu.dot_dimension_numbers<[1], [0], [0], [1], [0, 0, 1, 1], [], []>} : vector<8x256xf32>, vector<256x128xf32>, vector<8x128xf32> -> vector<8x128xf32>
    %13 = vector.broadcast %1 : vector<1x128xf32> to vector<8x128xf32>
    %14 = arith.addf %12, %13 : vector<8x128xf32>
    %cst_11 = arith.constant 0.000000e+00 : f32
    %15 = vector.broadcast %cst_11 : f32 to vector<8x128xf32>
    %16 = arith.maximumf %14, %15 : vector<8x128xf32>
    %c272 = arith.constant 272 : index
    %c0_12 = arith.constant 0 : index
    %17 = vector.load %arg2[%c272, %c0_12] : memref<656x256xf32, #tpu.memory_space<vmem>>, vector<128x256xf32>
    %cst_13 = arith.constant dense<0.000000e+00> : vector<8x256xf32>
    %18 = tpu.matmul %16, %17, %cst_13 {dimension_numbers = #tpu.dot_dimension_numbers<[1], [0], [0], [1], [0, 0, 1, 1], [], []>} : vector<8x128xf32>, vector<128x256xf32>, vector<8x256xf32> -> vector<8x256xf32>
    %19 = vector.broadcast %2 : vector<1x256xf32> to vector<8x256xf32>
    %20 = arith.addf %18, %19 : vector<8x256xf32>
    %cst_14 = arith.constant 0.000000e+00 : f32
    %21 = vector.broadcast %cst_14 : f32 to vector<8x256xf32>
    %22 = arith.maximumf %20, %21 : vector<8x256xf32>
    %c400 = arith.constant 400 : index
    %c0_15 = arith.constant 0 : index
    %23 = vector.load %arg2[%c400, %c0_15] : memref<656x256xf32, #tpu.memory_space<vmem>>, vector<256x128xf32>
    %cst_16 = arith.constant dense<0.000000e+00> : vector<8x128xf32>
    %24 = tpu.matmul %22, %23, %cst_16 {dimension_numbers = #tpu.dot_dimension_numbers<[1], [0], [0], [1], [0, 0, 1, 1], [], []>} : vector<8x256xf32>, vector<256x128xf32>, vector<8x128xf32> -> vector<8x128xf32>
    %25 = vector.broadcast %3 : vector<1x128xf32> to vector<8x128xf32>
    %26 = arith.addf %24, %25 : vector<8x128xf32>
    %27 = vector.extract_strided_slice %26 {offsets = [0, 15], sizes = [8, 3], strides = [1, 1]} : vector<8x128xf32> to vector<8x3xf32>
    %cst_17 = arith.constant dense<0xFF800000> : vector<8xf32>
    %28 = vector.multi_reduction <maximumf>, %27, %cst_17 [1] : vector<8x3xf32> to vector<8xf32>
    %29 = vector.shape_cast %28 : vector<8xf32> to vector<8x1xf32>
    %30 = vector.extract_strided_slice %26 {offsets = [0, 18], sizes = [8, 1], strides = [1, 1]} : vector<8x128xf32> to vector<8x1xf32>
    %31 = vector.broadcast %29 : vector<8x1xf32> to vector<8x128xf32>
    %32 = arith.subf %26, %31 : vector<8x128xf32>
    %33 = vector.broadcast %30 : vector<8x1xf32> to vector<8x128xf32>
    %34 = arith.addf %32, %33 : vector<8x128xf32>
    %c0_18 = arith.constant 0 : index
    %c0_19 = arith.constant 0 : index
    %35 = vector.load %arg4[%c0_18, %c0_19] : memref<8x128xf32, #tpu.memory_space<vmem>>, vector<8x128xf32>
    tpu.vector_store %arg4[%c0_18, %c0_19], %34 {strides = array<i32>} : memref<8x128xf32, #tpu.memory_space<vmem>>, vector<8x128xf32>,
    return
  }
  func.func @transform_0(%arg0: i32) -> (i32, i32) {
    %c0_i32 = arith.constant 0 : i32
    %c0_i32_0 = arith.constant 0 : i32
    return %arg0, %c0_i32 : i32, i32
  }
  func.func @transform_1(%arg0: i32) -> (i32, i32) {
    %c0_i32 = arith.constant 0 : i32
    %c0_i32_0 = arith.constant 0 : i32
    %c0_i32_1 = arith.constant 0 : i32
    return %c0_i32, %c0_i32_0 : i32, i32
  }
  func.func @transform_2(%arg0: i32) -> (i32, i32) {
    %c0_i32 = arith.constant 0 : i32
    %c0_i32_0 = arith.constant 0 : i32
    %c0_i32_1 = arith.constant 0 : i32
    return %c0_i32, %c0_i32_0 : i32, i32
  }
  func.func @transform_3(%arg0: i32) -> (i32, i32) {
    %c0_i32 = arith.constant 0 : i32
    %c0_i32_0 = arith.constant 0 : i32
    return %arg0, %c0_i32 : i32, i32
  }
}

</mosaic_0001>

<bundles_post_ra>
// kernel: qnetwork_forward.1
= control target key start
LH: loop header
LB: loop body
LE: loop exit
PB: predicated region body
PF: predicated region fallthrough
CT: control target
= control target key end

     0   :  { %8 = vsyncpa [#allocation3], 0  ;;  %s574_s12 = smov [#allocation2]   ;;  %s632_s0 = inlined_call_operand.vmem [shape: f32[8,16], index: 0, kind: input, shape index: {}]   ;;  %s633_s1 = inlined_call_operand.hbm [shape: f32[656,256], index: 1, kind: input, shape index: {}]   ;;  %s634_s2 = inlined_call_operand.vmem [shape: f32[4,256], index: 2, kind: input, shape index: {}]   ;;  %s635_s3 = inlined_call_operand.vmem [shape: f32[8,128], index: 3, kind: output, shape index: {}]  }
   0x1   :  { %s16_s13 = sshll.u32 %s574_s12, 4  ;;  %s17_s13 = int_to_ptr.vmem [resolvable:$true] %s16_s13 }
   0x2   :  { %s560_s14 = scalar_lea.vmem %s17_s13, 20992  ;;  %p565_p1 = scmp.lt.s32.totalorder %s17_s13, %s17_s13 }
   0x3   :  { %p561_p0 = scmp.ne.s32.totalorder %s17_s13, %s560_s14  ;;  %p566_p2 = scmp.lt.s32.totalorder %s560_s14, %s560_s14 }
   0x5   :  { %p567_p3 = por %p566_p2, %p565_p1 }
   0x7   :  { %p568_p4 = pnand %p567_p3, %p561_p0 }
   0x9   :  { %571 = shalt.err (!%p568_p4)
}
   0xa   :  { %s575_s15 = smov 256   ;;  %s576_s16 = smov 16  }
   0xb   :  { %22 = dma.hbm_to_vmem [thread:$0]  %s633_s1, 20992, %s17_s13, [#allocation3], %s575_s15, %s575_s15, %s576_s16  }
   0xc   :  { %572 = dma.done.wait [#allocation3], 20992  }
   0xd   :  { %573 = vsyncadd [#allocation3], 4294946304  ;;  %v577_v0 = vmov 0.0   ;;  %v37_v1 = vld [vmem:[#allocation2 + $0x18] sm:$0xff]  ;;  %v36_v2 = vld [vmem:[#allocation2 + $0x10] sm:$0xff]  ;;  %vm49_vm0 = vcmask 130048   ;;  %v39_v61 = vlaneseq }
   0xe   :  { %117 = vmatprep.mubr.f32.mxu0 %v577_v0  ;;  %v35_v3 = vld [vmem:[#allocation2 + $0x8] sm:$0xff]  ;;  %81 = vmatprep.subr.mxu0 %v37_v1  ;;  %v34_v4 = vld [vmem:[#allocation2] sm:$0xff]  ;;  %v157_v6 = vld [vmem:[#allocation2 + $0x210] sm:$0xff]  ;;  %vm455_vm1 = vcmask 146552  }
   0xf   :  { %v33_v5 = vld [vmem:[%s632_s0] sm:$0xff]  ;;  %82 = vmatpush1.msra.mxu0 %v36_v2  ;;  %476 = vmatprep.subr.mxu1 %v157_v6  ;;  %v141_v7 = vld [vmem:[#allocation2 + $0x110] sm:$0xff]  ;;  %v264_v38 = vld [vmem:[#allocation2 + $0x318] sm:$0xff]  ;;  %v605_v62 = vshrl.u32 %v39_v61, 7 }
  0x10   :  { %v156_v8 = vld [vmem:[#allocation2 + $0x200] sm:$0xff]  ;;  %83 = vmatprep.subr.mxu0 %v35_v3  ;;  %477 = vmatpush3.msra.mxu1 %v141_v7  ;;  %v155_v10 = vld [vmem:[#allocation2 + $0x1f0] sm:$0xff]  ;;  %v262_v40 = vld [vmem:[#allocation2 + $0x308] sm:$0xff] }
  0x11   :  { %v140_v9 = vld [vmem:[#allocation2 + $0x100] sm:$0xff]  ;;  %84 = vmatpush1.msra.mxu0 %v34_v4  ;;  %478 = vmatprep.subr.mxu1 %v156_v8  ;;  %v139_v11 = vld [vmem:[#allocation2 + $0xf0] sm:$0xff]  ;;  %v260_v42 = vld [vmem:[#allocation2 + $0x2f8] sm:$0xff]  ;;  %v41_v63 = vsub.s32 0, %v605_v62  ;;  %v45_v1 = vsub.s32 1, %v605_v62 }
  0x12   :  { %473 = vmatmul.mubr.msk.f32.vlgmr.msra.gmra.mxu0 %vm49_vm0, %v33_v5  ;;  %479 = vmatpush3.msra.mxu1 %v140_v9  ;;  %v154_v12 = vld [vmem:[#allocation2 + $0x1e0] sm:$0xff]  ;;  %v153_v14 = vld [vmem:[#allocation2 + $0x1d0] sm:$0xff]  ;;  %v258_v44 = vld [vmem:[#allocation2 + $0x2e8] sm:$0xff] }
  0x13   :  { %480 = vmatprep.subr.mxu1 %v155_v10  ;;  %v138_v13 = vld [vmem:[#allocation2 + $0xe0] sm:$0xff]  ;;  %340 = vmatprep.mubr.f32.mxu0 %v577_v0  ;;  %v137_v15 = vld [vmem:[#allocation2 + $0xd0] sm:$0xff]  ;;  %v256_v46 = vld [vmem:[#allocation2 + $0x2d8] sm:$0xff] }
  0x14   :  { %481 = vmatpush3.msra.mxu1 %v139_v11  ;;  %v152_v16 = vld [vmem:[#allocation2 + $0x1c0] sm:$0xff]  ;;  %v151_v18 = vld [vmem:[#allocation2 + $0x1b0] sm:$0xff]  ;;  %276 = vmatprep.subr.mxu0 %v264_v38  ;;  %v254_v48 = vld [vmem:[#allocation2 + $0x2c8] sm:$0xff] }
  0x15   :  { %482 = vmatprep.subr.mxu1 %v154_v12  ;;  %v136_v17 = vld [vmem:[#allocation2 + $0xc0] sm:$0xff]  ;;  %v135_v19 = vld [vmem:[#allocation2 + $0xb0] sm:$0xff]  ;;  %v252_v50 = vld [vmem:[#allocation2 + $0x2b8] sm:$0xff] }
  0x16   :  { %483 = vmatpush3.msra.mxu1 %v138_v13  ;;  %v150_v20 = vld [vmem:[#allocation2 + $0x1a0] sm:$0xff]  ;;  %v149_v22 = vld [vmem:[#allocation2 + $0x190] sm:$0xff]  ;;  %v250_v52 = vld [vmem:[#allocation2 + $0x2a8] sm:$0xff] }
  0x17   :  { %484 = vmatprep.subr.mxu1 %v153_v14  ;;  %v134_v21 = vld [vmem:[#allocation2 + $0xa0] sm:$0xff]  ;;  %v133_v23 = vld [vmem:[#allocation2 + $0x90] sm:$0xff]  ;;  %v248_v54 = vld [vmem:[#allocation2 + $0x298] sm:$0xff] }
  0x18   :  { %485 = vmatpush3.msra.mxu1 %v137_v15  ;;  %v148_v24 = vld [vmem:[#allocation2 + $0x180] sm:$0xff]  ;;  %v147_v26 = vld [vmem:[#allocation2 + $0x170] sm:$0xff]  ;;  %v246_v56 = vld [vmem:[#allocation2 + $0x288] sm:$0xff] }
  0x19   :  { %486 = vmatprep.subr.mxu1 %v152_v16  ;;  %v132_v25 = vld [vmem:[#allocation2 + $0x80] sm:$0xff]  ;;  %v131_v27 = vld [vmem:[#allocation2 + $0x70] sm:$0xff]  ;;  %v244_v58 = vld [vmem:[#allocation2 + $0x278] sm:$0xff] }
  0x1a   :  { %487 = vmatpush3.msra.mxu1 %v136_v17  ;;  %v146_v28 = vld [vmem:[#allocation2 + $0x160] sm:$0xff]  ;;  %v145_v30 = vld [vmem:[#allocation2 + $0x150] sm:$0xff]  ;;  %v242_v60 = vld [vmem:[#allocation2 + $0x268] sm:$0xff] }
  0x1b   :  { %488 = vmatprep.subr.mxu1 %v151_v18  ;;  %v130_v29 = vld [vmem:[#allocation2 + $0x60] sm:$0xff]  ;;  %v129_v31 = vld [vmem:[#allocation2 + $0x50] sm:$0xff]  ;;  %v240_v11 = vld [vmem:[#allocation2 + $0x258] sm:$0xff] }
  0x1c   :  { %489 = vmatpush3.msra.mxu1 %v135_v19  ;;  %v144_v32 = vld [vmem:[#allocation2 + $0x140] sm:$0xff]  ;;  %v143_v34 = vld [vmem:[#allocation2 + $0x130] sm:$0xff]  ;;  %v238_v13 = vld [vmem:[#allocation2 + $0x248] sm:$0xff] }
  0x1d   :  { %490 = vmatprep.subr.mxu1 %v150_v20  ;;  %v128_v33 = vld [vmem:[#allocation2 + $0x40] sm:$0xff]  ;;  %v127_v35 = vld [vmem:[#allocation2 + $0x30] sm:$0xff]  ;;  %v236_v15 = vld [vmem:[#allocation2 + $0x238] sm:$0xff] }
  0x1e   :  { %491 = vmatpush3.msra.mxu1 %v134_v21  ;;  %v142_v36 = vld [vmem:[#allocation2 + $0x120] sm:$0xff]  ;;  %v263_v39 = vld [vmem:[#allocation2 + $0x310] sm:$0xff]  ;;  %v234_v17 = vld [vmem:[#allocation2 + $0x228] sm:$0xff] }
  0x1f   :  { %492 = vmatprep.subr.mxu1 %v149_v22  ;;  %v126_v37 = vld [vmem:[#allocation2 + $0x20] sm:$0xff]  ;;  %277 = vmatpush1.msra.mxu0 %v263_v39  ;;  %v259_v43 = vld [vmem:[#allocation2 + $0x2f0] sm:$0xff] }
  0x20   :  { %493 = vmatpush3.msra.mxu1 %v133_v23  ;;  %v261_v41 = vld [vmem:[#allocation2 + $0x300] sm:$0xff]  ;;  %278 = vmatprep.subr.mxu0 %v262_v40  ;;  %v255_v47 = vld [vmem:[#allocation2 + $0x2d0] sm:$0xff] }
  0x21   :  { %494 = vmatprep.subr.mxu1 %v148_v24  ;;  %279 = vmatpush1.msra.mxu0 %v261_v41  ;;  %v257_v45 = vld [vmem:[#allocation2 + $0x2e0] sm:$0xff]  ;;  %v251_v51 = vld [vmem:[#allocation2 + $0x2b0] sm:$0xff] }
  0x22   :  { %495 = vmatpush3.msra.mxu1 %v132_v25  ;;  %280 = vmatprep.subr.mxu0 %v260_v42  ;;  %v253_v49 = vld [vmem:[#allocation2 + $0x2c0] sm:$0xff]  ;;  %v247_v55 = vld [vmem:[#allocation2 + $0x290] sm:$0xff] }
  0x23   :  { %496 = vmatprep.subr.mxu1 %v147_v26  ;;  %281 = vmatpush1.msra.mxu0 %v259_v43  ;;  %v249_v53 = vld [vmem:[#allocation2 + $0x2a0] sm:$0xff]  ;;  %v243_v59 = vld [vmem:[#allocation2 + $0x270] sm:$0xff] }
  0x24   :  { %497 = vmatpush3.msra.mxu1 %v131_v27  ;;  %282 = vmatprep.subr.mxu0 %v258_v44  ;;  %v245_v57 = vld [vmem:[#allocation2 + $0x280] sm:$0xff]  ;;  %v239_v12 = vld [vmem:[#allocation2 + $0x250] sm:$0xff] }
  0x25   :  { %498 = vmatprep.subr.mxu1 %v146_v28  ;;  %283 = vmatpush1.msra.mxu0 %v257_v45  ;;  %v28_v0 = vld [vmem:[%s634_s2] ss:$4 sm:$0x3]  ;;  %v235_v16 = vld [vmem:[#allocation2 + $0x230] sm:$0xff]  ;;  %v474_v44 = vld [vmem:[%s634_s2 + $0x1] ss:$0 sm:$0xff] }
  0x26   :  { %499 = vmatpush3.msra.mxu1 %v130_v29  ;;  %284 = vmatprep.subr.mxu0 %v256_v46  ;;  %v42_v2 = vrot.slane %v28_v0, %v41_v63  ;;  %v46_v3 = vrot.slane %v28_v0, %v45_v1  ;;  %v241_v10 = vld [vmem:[#allocation2 + $0x260] sm:$0xff]  ;;  %v380_v19 = vld [vmem:[#allocation2 + $0x510] sm:$0xff] }
  0x27   :  { %500 = vmatprep.subr.mxu1 %v145_v30  ;;  %285 = vmatpush1.msra.mxu0 %v255_v47  ;;  %v237_v14 = vld [vmem:[#allocation2 + $0x240] sm:$0xff]  ;;  %v364_v20 = vld [vmem:[#allocation2 + $0x410] sm:$0xff] }
  0x28   :  { %501 = vmatpush3.msra.mxu1 %v129_v31  ;;  %286 = vmatprep.subr.mxu0 %v254_v48  ;;  %v233_v18 = vld [vmem:[#allocation2 + $0x220] sm:$0xff]  ;;  %v378_v23 = vld [vmem:[#allocation2 + $0x4f0] sm:$0xff] }
  0x29   :  { %502 = vmatprep.subr.mxu1 %v144_v32  ;;  %287 = vmatpush1.msra.mxu0 %v253_v49  ;;  %v379_v21 = vld [vmem:[#allocation2 + $0x500] sm:$0xff]  ;;  %v362_v24 = vld [vmem:[#allocation2 + $0x3f0] sm:$0xff] }
  0x2a   :  { %503 = vmatpush3.msra.mxu1 %v128_v33  ;;  %288 = vmatprep.subr.mxu0 %v252_v50  ;;  %v363_v22 = vld [vmem:[#allocation2 + $0x400] sm:$0xff]  ;;  %v376_v27 = vld [vmem:[#allocation2 + $0x4d0] sm:$0xff] }
  0x2b   :  { %504 = vmatprep.subr.mxu1 %v143_v34  ;;  %289 = vmatpush1.msra.mxu0 %v251_v51  ;;  %v377_v25 = vld [vmem:[#allocation2 + $0x4e0] sm:$0xff]  ;;  %v360_v28 = vld [vmem:[#allocation2 + $0x3d0] sm:$0xff] }
  0x2c   :  { %505 = vmatpush3.msra.mxu1 %v127_v35  ;;  %290 = vmatprep.subr.mxu0 %v250_v52  ;;  %v361_v26 = vld [vmem:[#allocation2 + $0x3e0] sm:$0xff]  ;;  %v374_v31 = vld [vmem:[#allocation2 + $0x4b0] sm:$0xff] }
  0x2d   :  { %506 = vmatprep.subr.mxu1 %v142_v36  ;;  %291 = vmatpush1.msra.mxu0 %v249_v53  ;;  %v375_v29 = vld [vmem:[#allocation2 + $0x4c0] sm:$0xff]  ;;  %v358_v32 = vld [vmem:[#allocation2 + $0x3b0] sm:$0xff] }
  0x2e   :  { %507 = vmatpush3.msra.mxu1 %v126_v37  ;;  %292 = vmatprep.subr.mxu0 %v248_v54  ;;  %v359_v30 = vld [vmem:[#allocation2 + $0x3c0] sm:$0xff]  ;;  %v372_v35 = vld [vmem:[#allocation2 + $0x490] sm:$0xff] }
  0x2f   :  { %293 = vmatpush1.msra.mxu0 %v247_v55  ;;  %511 = vmatprep.subr.mxu1 %v380_v19  ;;  %v373_v33 = vld [vmem:[#allocation2 + $0x4a0] sm:$0xff]  ;;  %v356_v36 = vld [vmem:[#allocation2 + $0x390] sm:$0xff] }
  0x30   :  { %294 = vmatprep.subr.mxu0 %v246_v56  ;;  %v357_v34 = vld [vmem:[#allocation2 + $0x3a0] sm:$0xff]  ;;  %v370_v39 = vld [vmem:[#allocation2 + $0x470] sm:$0xff] }
  0x31   :  { %295 = vmatpush1.msra.mxu0 %v245_v57  ;;  %v371_v37 = vld [vmem:[#allocation2 + $0x480] sm:$0xff]  ;;  %v354_v40 = vld [vmem:[#allocation2 + $0x370] sm:$0xff] }
  0x32   :  { %296 = vmatprep.subr.mxu0 %v244_v58  ;;  %v355_v38 = vld [vmem:[#allocation2 + $0x380] sm:$0xff]  ;;  %v368_v49 = vld [vmem:[#allocation2 + $0x450] sm:$0xff] }
  0x33   :  { %297 = vmatpush1.msra.mxu0 %v243_v59  ;;  %v369_v41 = vld [vmem:[#allocation2 + $0x460] sm:$0xff]  ;;  %v352_v50 = vld [vmem:[#allocation2 + $0x350] sm:$0xff] }
  0x34   :  { %298 = vmatprep.subr.mxu0 %v242_v60  ;;  %v353_v42 = vld [vmem:[#allocation2 + $0x360] sm:$0xff]  ;;  %v366_v53 = vld [vmem:[#allocation2 + $0x430] sm:$0xff] }
  0x35   :  { %299 = vmatpush1.msra.mxu0 %v241_v10  ;;  %v367_v51 = vld [vmem:[#allocation2 + $0x440] sm:$0xff]  ;;  %v350_v54 = vld [vmem:[#allocation2 + $0x330] sm:$0xff] }
  0x36   :  { %300 = vmatprep.subr.mxu0 %v240_v11  ;;  %v351_v52 = vld [vmem:[#allocation2 + $0x340] sm:$0xff] }
  0x37   :  { %301 = vmatpush1.msra.mxu0 %v239_v12  ;;  %v365_v55 = vld [vmem:[#allocation2 + $0x420] sm:$0xff] }
  0x38   :  { %302 = vmatprep.subr.mxu0 %v238_v13  ;;  %v349_v56 = vld [vmem:[#allocation2 + $0x320] sm:$0xff] }
  0x39   :  { %303 = vmatpush1.msra.mxu0 %v237_v14  ;;  %v472_v57 = vld [vmem:[%s634_s2 + $0x2] ss:$4 sm:$0x3] }
  0x3a   :  { %304 = vmatprep.subr.mxu0 %v236_v15  ;;  %v269_v58 = vrot.slane %v472_v57, %v41_v63  ;;  %v273_v59 = vrot.slane %v472_v57, %v45_v1 }
  0x3b   :  { %305 = vmatpush1.msra.mxu0 %v235_v16 }
  0x3c   :  { %306 = vmatprep.subr.mxu0 %v234_v17 }
  0x3d   :  { %307 = vmatpush1.msra.mxu0 %v233_v18 }
  0xd2   :  { %v119_v4 = vpop.f32.mrf.mxu0 }
  0xd3   :  { %v120_v5 = vadd.f32 %v119_v4, %v42_v2 }
  0xd4   :  { %v121_v6 = vpop.f32.mrf.mxu0 }
  0xd5   :  { %v122_v7 = vadd.f32 %v121_v6, %v46_v3  ;;  %v124_v9 = vmax.f32 %v120_v5, 0.0  ;;  %v578_v5 = vmov 18  }
  0xd6   :  { %551 = vset.pattern.permute.xlu0 %v578_v5 }
  0xd7   :  { %v125_v8 = vmax.f32 %v122_v7, 0.0  ;;  %v475_v7 = vld [vmem:[%s634_s2 + $0x3] ss:$0 sm:$0xff] }
  0xd9   :  { %226 = vmatprep.mubr.f32.mxu1 %v125_v8 }
  0xda   :  { %227 = vmatmul.mubr.f32.vlgmr.msra.gmra.mxu1 %v124_v9 }
  0xdb   :  { %512 = vmatpush3.msra.mxu1 %v364_v20 }
  0xdc   :  { %513 = vmatprep.subr.mxu1 %v379_v21 }
  0xdd   :  { %514 = vmatpush3.msra.mxu1 %v363_v22 }
  0xde   :  { %515 = vmatprep.subr.mxu1 %v378_v23 }
  0xdf   :  { %516 = vmatpush3.msra.mxu1 %v362_v24 }
  0xe0   :  { %517 = vmatprep.subr.mxu1 %v377_v25 }
  0xe1   :  { %518 = vmatpush3.msra.mxu1 %v361_v26 }
  0xe2   :  { %519 = vmatprep.subr.mxu1 %v376_v27 }
  0xe3   :  { %520 = vmatpush3.msra.mxu1 %v360_v28 }
  0xe4   :  { %521 = vmatprep.subr.mxu1 %v375_v29 }
  0xe5   :  { %522 = vmatpush3.msra.mxu1 %v359_v30 }
  0xe6   :  { %523 = vmatprep.subr.mxu1 %v374_v31 }
  0xe7   :  { %524 = vmatpush3.msra.mxu1 %v358_v32 }
  0xe8   :  { %525 = vmatprep.subr.mxu1 %v373_v33 }
  0xe9   :  { %526 = vmatpush3.msra.mxu1 %v357_v34 }
  0xea   :  { %527 = vmatprep.subr.mxu1 %v372_v35 }
  0xeb   :  { %528 = vmatpush3.msra.mxu1 %v356_v36 }
  0xec   :  { %529 = vmatprep.subr.mxu1 %v371_v37 }
  0xed   :  { %530 = vmatpush3.msra.mxu1 %v355_v38 }
  0xee   :  { %531 = vmatprep.subr.mxu1 %v370_v39 }
  0xef   :  { %532 = vmatpush3.msra.mxu1 %v354_v40 }
  0xf0   :  { %533 = vmatprep.subr.mxu1 %v369_v41 }
  0xf1   :  { %534 = vmatpush3.msra.mxu1 %v353_v42 }
  0xf2   :  { %535 = vmatprep.subr.mxu1 %v368_v49 }
  0xf3   :  { %536 = vmatpush3.msra.mxu1 %v352_v50 }
  0xf4   :  { %537 = vmatprep.subr.mxu1 %v367_v51 }
  0xf5   :  { %538 = vmatpush3.msra.mxu1 %v351_v52 }
  0xf6   :  { %539 = vmatprep.subr.mxu1 %v366_v53 }
  0xf7   :  { %540 = vmatpush3.msra.mxu1 %v350_v54 }
  0xf8   :  { %541 = vmatprep.subr.mxu1 %v365_v55 }
  0xf9   :  { %542 = vmatpush3.msra.mxu1 %v349_v56 }
 0x19a   :  { %v508_v43 = vpop.f32.mrf.mxu1 }
 0x19c   :  { %v509_v45 = vpop.f32.mrf.mxu1 }
 0x19d   :  { %v510_v46 = vadd.f32 %v509_v45, %v508_v43 }
 0x19f   :  { %v229_v47 = vadd.f32 %v510_v46, %v474_v44 }
 0x1a1   :  { %v232_v48 = vmax.f32 %v229_v47, 0.0 }
 0x1a3   :  { %341 = vmatmul.mubr.f32.vlgmr.msra.gmra.mxu0 %v232_v48 }
 0x263   :  { %v342_v60 = vpop.f32.mrf.mxu0 }
 0x264   :  { %v343_v61 = vadd.f32 %v342_v60, %v269_v58 }
 0x265   :  { %v344_v0 = vpop.f32.mrf.mxu0 }
 0x266   :  { %v345_v2 = vadd.f32 %v344_v0, %v273_v59  ;;  %v347_v4 = vmax.f32 %v343_v61, 0.0 }
 0x268   :  { %v348_v3 = vmax.f32 %v345_v2, 0.0 }
 0x26a   :  { %449 = vmatprep.mubr.f32.mxu1 %v348_v3 }
 0x26b   :  { %450 = vmatmul.mubr.f32.vlgmr.msra.gmra.mxu1 %v347_v4 }
 0x32b   :  { %v543_v6 = vpop.f32.mrf.mxu1 }
 0x32d   :  { %v544_v8 = vpop.f32.mrf.mxu1 }
 0x32e   :  { %v545_v63 = vadd.f32 %v544_v8, %v543_v6 }
 0x330   :  { %v452_v62 = vadd.f32 %v545_v63, %v475_v7 }
 0x332   :  { %v456_v1 = vsel %vm455_vm1, %v452_v62, -inf }
 0x333   :  { %457 = vmax.xlane.f32.xlu0 %v456_v1 }
 0x349   :  { %462 = vperm.xlu0 %551, %v452_v62  }
 0x3bc   :  { %v458_v9 = vpop.xlane.xlu0 %457 }
 0x3bd   :  { %v459_v10 = vsub.f32 %v452_v62, %v458_v9 }
 0x3c4   :  { %v463_v11 = vpop.permute.xlu0 %462 }
 0x3c5   :  { %v465_v12 = vadd.f32 %v463_v11, %v459_v10 }
 0x3c7   :  { %466 = vst [vmem:[%s635_s3] sm:$0xff] %v465_v12 }
 0x3c8   :  { %471 = vsyncpa [#allocation3], 1 }

</bundles_post_ra>
